<compile_context>
chip_gen: v5e
topology: v5e:2x2
jax: 0.10.0
libtpu: 0.0.40
codegen_flags: <defaults>
</compile_context>

<pallas_src>
import jax
import jax.numpy as jnp
from jax.experimental import pallas as pl
from jax.experimental.pallas import tpu as pltpu


# ----------------------------------------------------------------------------
# tiling helpers
# ----------------------------------------------------------------------------
def _out_block_cap_bytes():
    """Generation-aware cap on the f32 output block (drives TH / plane batching).

    Bigger blocks amortize the per-grid-step overhead (relatively 2-3x more
    expensive on v7x); v5e stays smaller so double-buffered in+out blocks keep
    comfortable headroom on the lowest-bandwidth chip.
    """
    kind = ""
    try:
        kind = jax.devices()[0].device_kind.lower()
    except Exception:  # pragma: no cover - defensive; fall through to default
        pass
    if "v5" in kind or "v4" in kind:
        return 4 << 20
    if "v6" in kind or "v7" in kind or "7x" in kind:
        return 8 << 20
    return 6 << 20  # unknown chip: middle ground


def _vmem_limit_bytes(in_block_bytes, out_block_bytes):
    """Scoped-VMEM request: 2x double-buffered in+out blocks plus margin."""
    need = 2 * (in_block_bytes + out_block_bytes) + (4 << 20)
    return int(min(max(need, 16 << 20), 48 << 20))


def _pick_plane_batch(nc, plane_out_bytes, cap):
    """Largest divisor of nc whose batched output block fits the cap, preferring
    to leave >= 2 grid steps (double-buffer overlap + v7x megacore split)."""
    fits = [d for d in range(1, nc + 1) if nc % d == 0 and d * plane_out_bytes <= cap]
    two_plus = [d for d in fits if nc // d >= 2]
    return max(two_plus) if two_plus else max(fits)


def _row_tile(Hp, Wp, min_mult, cap):
    """Largest row tile TH (multiple of min_mult, <= Hp) with TH*Wp*4 <= cap."""
    th = (cap // (Wp * 4)) // min_mult * min_mult
    return max(min_mult, min(th, Hp))


# ----------------------------------------------------------------------------
# kernels
# ----------------------------------------------------------------------------
def _make_plane_kernel(H, W, Hp, Wp):
    """One grid step = a batch of whole planes: cast + FMA + zero-pad H/W."""
    pad_h, pad_w = Hp - H, Wp - W

    def kernel(scale_ref, bias_ref, x_ref, o_ref):
        b = o_ref.shape[0]
        # cast fused in-kernel; scale/bias are (b,1,1) and broadcast per plane
        y = x_ref[...].astype(jnp.float32) * scale_ref[...] + bias_ref[...]
        o_ref[:, :H, :W] = y
        if pad_w:
            o_ref[:, :H, W:] = jnp.zeros((b, H, pad_w), jnp.float32)
        if pad_h:
            # bottom strip: one full-width lane-dense store
            o_ref[:, H:, :] = jnp.zeros((b, pad_h, Wp), jnp.float32)

    return kernel


def _make_rowtile_kernel(H, W, Wp, TH, max_in_tile, need_row_mask, n_row_tiles):
    """One grid step = one (1, TH, *) row tile of one plane."""
    pad_w = Wp - W

    def _fma(scale_ref, bias_ref, x_ref):
        return x_ref[...].astype(jnp.float32) * scale_ref[...] + bias_ref[...]

    def _store(o_ref, y):
        o_ref[:, :, :W] = y
        if pad_w:
            # Narrow (<32 col) right-pad strip; see module header for why this
            # stays a separate store instead of an in-vreg widened single store.
            o_ref[:, :, W:] = jnp.zeros((1, TH, pad_w), jnp.float32)

    def kernel(scale_ref, bias_ref, x_ref, o_ref):
        t = pl.program_id(1)

        # Fast path: every input row of this tile is valid -> no row mask.
        if (max_in_tile > 0) or (not need_row_mask):
            fast_cond = (t < max_in_tile) if need_row_mask else (t <= max_in_tile)

            @pl.when(fast_cond)
            def _():
                _store(o_ref, _fma(scale_ref, bias_ref, x_ref))

        if need_row_mask:
            # Boundary tile: the input block (clipped at the array edge) holds
            # stale/garbage data in rows >= H.  Those rows MUST be discarded
            # with a select (jnp.where), never a multiply-by-zero, since the
            # garbage may be NaN/Inf.
            @pl.when(t == max_in_tile)
            def _():
                y = _fma(scale_ref, bias_ref, x_ref)
                rows = max_in_tile * TH + jax.lax.broadcasted_iota(
                    jnp.int32, y.shape, 1)
                _store(o_ref, jnp.where(rows < H, y, 0.0))

        if n_row_tiles - 1 > max_in_tile:
            # Fully padded tiles: pure zeros, single full-width store, no
            # load/cast/FMA.  The clamped input index_map means no extra HBM
            # fetch happens for these steps either.
            @pl.when(t > max_in_tile)
            def _():
                o_ref[...] = jnp.zeros_like(o_ref)

    return kernel


# ----------------------------------------------------------------------------
# wrapper == RankSaliencyNetwork.preprocess_image
# ----------------------------------------------------------------------------
def preprocess_image(images, pixel_mean, pixel_std, size_divisibility=32,
                     max_out_block_bytes=None):
    """Fused cast + per-channel normalize + zero-pad (H, W up to divisibility).

    images: (N, C, H, W), any real dtype.  Returns (N, C, Hp, Wp) float32.
    """
    N, C, H, W = images.shape
    sd = max(int(size_divisibility), 1)
    Hp = pl.cdiv(H, sd) * sd
    Wp = pl.cdiv(W, sd) * sd
    NC = N * C
    itemsize = jnp.dtype(images.dtype).itemsize

    pixel_mean = jnp.asarray(pixel_mean, jnp.float32).reshape(-1)
    pixel_std = jnp.asarray(pixel_std, jnp.float32).reshape(-1)
    assert pixel_mean.shape[0] == C and pixel_std.shape[0] == C

    # FMA form: (x - mean)/std == x*(1/std) + (-mean/std).  ~1 ulp rounding
    # difference vs. the PyTorch reference; well within 1e-5 tolerance.
    scale = jnp.tile(1.0 / pixel_std, N).reshape(NC, 1, 1)
    bias = jnp.tile(-pixel_mean / pixel_std, N).reshape(NC, 1, 1)

    x = images.reshape(NC, H, W)                       # contiguous reshape (free)

    cap = int(max_out_block_bytes) if max_out_block_bytes else _out_block_cap_bytes()
    plane_out_bytes = Hp * Wp * 4
    cost = pl.CostEstimate(flops=2 * NC * H * W, transcendentals=0,
                           bytes_accessed=NC * (H * W * itemsize + Hp * Wp * 4))

    if plane_out_bytes <= cap:
        # --- small/narrow planes: batch whole planes per block -------------
        b_nc = _pick_plane_batch(NC, plane_out_bytes, cap)
        out = pl.pallas_call(
            _make_plane_kernel(H, W, Hp, Wp),
            out_shape=jax.ShapeDtypeStruct((NC, Hp, Wp), jnp.float32),
            grid=(NC // b_nc,),
            in_specs=[
                pl.BlockSpec((b_nc, 1, 1), lambda r: (r, 0, 0)),   # scale
                pl.BlockSpec((b_nc, 1, 1), lambda r: (r, 0, 0)),   # bias
                pl.BlockSpec((b_nc, H, W), lambda r: (r, 0, 0)),   # image planes
            ],
            out_specs=pl.BlockSpec((b_nc, Hp, Wp), lambda r: (r, 0, 0)),
            compiler_params=pltpu.CompilerParams(
                dimension_semantics=("parallel",),
                vmem_limit_bytes=_vmem_limit_bytes(
                    b_nc * H * W * itemsize, b_nc * plane_out_bytes)),
            cost_estimate=cost,
        )(scale, bias, x)
        return out.reshape(N, C, Hp, Wp)

    # --- large planes: one plane per grid row, padded height tiled ---------
    min_mult = {1: 32, 2: 16, 4: 8}.get(itemsize, 8)   # sublane packing of input dtype
    TH = _row_tile(Hp, Wp, min_mult, cap)
    n_row_tiles = pl.cdiv(Hp, TH)
    max_in_tile = pl.cdiv(H, TH) - 1                   # last row block with valid rows
    need_row_mask = (H % TH) != 0

    out = pl.pallas_call(
        _make_rowtile_kernel(H, W, Wp, TH, max_in_tile, need_row_mask, n_row_tiles),
        out_shape=jax.ShapeDtypeStruct((NC, Hp, Wp), jnp.float32),
        grid=(NC, n_row_tiles),
        in_specs=[
            pl.BlockSpec((1, 1, 1), lambda r, t: (r, 0, 0)),       # scale
            pl.BlockSpec((1, 1, 1), lambda r, t: (r, 0, 0)),       # bias
            # Clamp the row-block index so fully-padded output tiles reuse (and
            # skip re-fetching) the last valid input block.  Relies on Pallas
            # clipping edge blocks at the array boundary; rows >= H are masked
            # in-kernel on the boundary tile.
            pl.BlockSpec((1, TH, W),
                         lambda r, t: (r, jnp.minimum(t, max_in_tile), 0)),
        ],
        out_specs=pl.BlockSpec((1, TH, Wp), lambda r, t: (r, t, 0)),
        compiler_params=pltpu.CompilerParams(
            dimension_semantics=("parallel", "parallel"),          # megacore split
            vmem_limit_bytes=_vmem_limit_bytes(TH * W * itemsize, TH * Wp * 4)),
        cost_estimate=cost,
    )(scale, bias, x)
    return out.reshape(N, C, Hp, Wp)


def rank_saliency_network_forward(images, pixel_mean, pixel_std,
                                  size_divisibility=32):
    """Forward pass of RankSaliencyNetwork up to the parts defined in-module."""
    images_tensor = preprocess_image(images, pixel_mean, pixel_std,
                                     size_divisibility)
    # TODO(synk): backbone / bottom_up_fuse / panet_fpn / proposal_generator /
    # roi_heads / relation_head are built from external registries and are not
    # reproducible from this module alone.
    return images_tensor


# ----------------------------------------------------------------------------
# self-test
# ----------------------------------------------------------------------------
if __name__ == "__main__":
    key = jax.random.PRNGKey(0)
    k1, k2, k3 = jax.random.split(key, 3)

    # detectron2 cfg.MODEL.PIXEL_MEAN / PIXEL_STD defaults.
    pixel_mean = jnp.array([103.530, 116.280, 123.675], jnp.float32)
    pixel_std = jnp.array([57.375, 57.120, 58.395], jnp.float32)

    def _ref(imgs, Hp, Wp):
        y = (imgs.astype(jnp.float32) - pixel_mean[None, :, None, None]) \
            / pixel_std[None, :, None, None]
        H, W = imgs.shape[2], imgs.shape[3]
        return jnp.pad(y, ((0, 0), (0, 0), (0, Hp - H), (0, Wp - W)))

    # Case 1: f32 images, 16x16 -> 32x32 (small-plane path, planes batched).
    imgs1 = jax.random.uniform(k1, (2, 3, 16, 16), jnp.float32) * 255.0
    out1 = jax.block_until_ready(
        rank_saliency_network_forward(imgs1, pixel_mean, pixel_std))
    assert out1.shape == (2, 3, 32, 32), out1.shape
    assert jnp.allclose(out1, _ref(imgs1, 32, 32), atol=1e-5, rtol=1e-5), \
        "mismatch (f32 small-plane case)"

    # Case 2: uint8 images (cast fused in-kernel), 48x128 -> 64x128.
    imgs2 = jax.random.randint(k2, (1, 3, 48, 128), 0, 256).astype(jnp.uint8)
    out2 = jax.block_until_ready(
        rank_saliency_network_forward(imgs2, pixel_mean, pixel_std))
    assert out2.shape == (1, 3, 64, 128), out2.shape
    assert jnp.allclose(out2, _ref(imgs2, 64, 128), atol=1e-5, rtol=1e-5), \
        "mismatch (uint8 small-plane case)"

    # Cases 3/4: force tiny block caps so the row-tiled path (boundary row mask,
    # clamped input index, pure-zero pad tiles, column pad) is exercised while
    # keeping shapes small.
    imgs3 = jax.random.uniform(k3, (1, 3, 100, 200), jnp.float32) * 255.0
    ref3 = _ref(imgs3, 128, 224)
    for forced_cap in (96 << 10, 32 << 10):
        out3 = jax.block_until_ready(
            preprocess_image(imgs3, pixel_mean, pixel_std,
                             max_out_block_bytes=forced_cap))
        assert out3.shape == (1, 3, 128, 224), out3.shape
        assert jnp.allclose(out3, ref3, atol=1e-5, rtol=1e-5), \
            f"mismatch (row-tiled path, cap={forced_cap})"

    print("KERNEL_OK")
</pallas_src>

<mosaic_0001>
module attributes {stable_mosaic.version = 11 : i64} {
  func.func @kernel(%arg0: i32, %arg1: memref<3x1x1xf32, #tpu.memory_space<vmem>>, %arg2: memref<3x1x1xf32, #tpu.memory_space<vmem>>, %arg3: memref<3x16x16xf32, #tpu.memory_space<vmem>>, %arg4: memref<3x32x32xf32, #tpu.memory_space<vmem>>) attributes {dimension_semantics = [#tpu.dimension_semantics<parallel>], iteration_bounds = array<i64: 2>, scalar_prefetch = 0 : i64, scratch_operands = 0 : i64, tpu.core_type = #tpu.core_type<tc>, window_params = [{transform_indices = @transform_0, window_bounds = array<i64: 3, 1, 1>}, {transform_indices = @transform_1, window_bounds = array<i64: 3, 1, 1>}, {transform_indices = @transform_2, window_bounds = array<i64: 3, 16, 16>}, {transform_indices = @transform_3, window_bounds = array<i64: 3, 32, 32>}]} {
    %c0 = arith.constant 0 : index
    %c0_0 = arith.constant 0 : index
    %c0_1 = arith.constant 0 : index
    %0 = vector.load %arg3[%c0, %c0_0, %c0_1] : memref<3x16x16xf32, #tpu.memory_space<vmem>>, vector<3x16x16xf32>
    %c0_2 = arith.constant 0 : index
    %c0_3 = arith.constant 0 : index
    %c0_4 = arith.constant 0 : index
    %1 = vector.load %arg1[%c0_2, %c0_3, %c0_4] : memref<3x1x1xf32, #tpu.memory_space<vmem>>, vector<3x1x1xf32>
    %2 = vector.broadcast %1 : vector<3x1x1xf32> to vector<3x16x16xf32>
    %3 = arith.mulf %0, %2 : vector<3x16x16xf32>
    %c0_5 = arith.constant 0 : index
    %c0_6 = arith.constant 0 : index
    %c0_7 = arith.constant 0 : index
    %4 = vector.load %arg2[%c0_5, %c0_6, %c0_7] : memref<3x1x1xf32, #tpu.memory_space<vmem>>, vector<3x1x1xf32>
    %5 = vector.broadcast %4 : vector<3x1x1xf32> to vector<3x16x16xf32>
    %6 = arith.addf %3, %5 : vector<3x16x16xf32>
    %c0_8 = arith.constant 0 : index
    %c0_9 = arith.constant 0 : index
    %c0_10 = arith.constant 0 : index
    %7 = vector.load %arg4[%c0_8, %c0_9, %c0_10] : memref<3x32x32xf32, #tpu.memory_space<vmem>>, vector<3x16x16xf32>
    tpu.vector_store %arg4[%c0_8, %c0_9, %c0_10], %6 {strides = array<i32>} : memref<3x32x32xf32, #tpu.memory_space<vmem>>, vector<3x16x16xf32>,
    %cst = arith.constant 0.000000e+00 : f32
    %8 = vector.broadcast %cst : f32 to vector<3x16x16xf32>
    %c0_11 = arith.constant 0 : index
    %c0_12 = arith.constant 0 : index
    %c16 = arith.constant 16 : index
    %9 = vector.load %arg4[%c0_11, %c0_12, %c16] : memref<3x32x32xf32, #tpu.memory_space<vmem>>, vector<3x16x16xf32>
    tpu.vector_store %arg4[%c0_11, %c0_12, %c16], %8 {strides = array<i32>} : memref<3x32x32xf32, #tpu.memory_space<vmem>>, vector<3x16x16xf32>,
    %cst_13 = arith.constant 0.000000e+00 : f32
    %10 = vector.broadcast %cst_13 : f32 to vector<3x16x32xf32>
    %c0_14 = arith.constant 0 : index
    %c16_15 = arith.constant 16 : index
    %c0_16 = arith.constant 0 : index
    %11 = vector.load %arg4[%c0_14, %c16_15, %c0_16] : memref<3x32x32xf32, #tpu.memory_space<vmem>>, vector<3x16x32xf32>
    tpu.vector_store %arg4[%c0_14, %c16_15, %c0_16], %10 {strides = array<i32>} : memref<3x32x32xf32, #tpu.memory_space<vmem>>, vector<3x16x32xf32>,
    return
  }
  func.func @transform_0(%arg0: i32) -> (i32, i32, i32) {
    %c0_i32 = arith.constant 0 : i32
    %c0_i32_0 = arith.constant 0 : i32
    %c0_i32_1 = arith.constant 0 : i32
    return %arg0, %c0_i32, %c0_i32_0 : i32, i32, i32
  }
  func.func @transform_1(%arg0: i32) -> (i32, i32, i32) {
    %c0_i32 = arith.constant 0 : i32
    %c0_i32_0 = arith.constant 0 : i32
    %c0_i32_1 = arith.constant 0 : i32
    return %arg0, %c0_i32, %c0_i32_0 : i32, i32, i32
  }
  func.func @transform_2(%arg0: i32) -> (i32, i32, i32) {
    %c0_i32 = arith.constant 0 : i32
    %c0_i32_0 = arith.constant 0 : i32
    %c0_i32_1 = arith.constant 0 : i32
    return %arg0, %c0_i32, %c0_i32_0 : i32, i32, i32
  }
  func.func @transform_3(%arg0: i32) -> (i32, i32, i32) {
    %c0_i32 = arith.constant 0 : i32
    %c0_i32_0 = arith.constant 0 : i32
    %c0_i32_1 = arith.constant 0 : i32
    return %arg0, %c0_i32, %c0_i32_0 : i32, i32, i32
  }
}

</mosaic_0001>

<bundles_post_ra>
// kernel: tpu_custom_call.1
= control target key start
LH: loop header
LB: loop body
LE: loop exit
PB: predicated region body
PF: predicated region fallthrough
CT: control target
= control target key end

     0   :  { %8 = vsyncpa [#allocation3], 0  ;;  %s791_s0 = inlined_call_operand.vmem [shape: f32[6,1,1], index: 0, kind: input, shape index: {}]   ;;  %s792_s1 = inlined_call_operand.vmem [shape: f32[6,1,1], index: 1, kind: input, shape index: {}]   ;;  %s793_s2 = inlined_call_operand.hbm [shape: f32[6,16,16], index: 2, kind: input, shape index: {}]   ;;  %s794_s3 = inlined_call_operand.hbm [shape: f32[6,32,32], index: 3, kind: output, shape index: {}]  }
   0x1   :  { %10 = vsyncpa [#allocation3 + $0x1], 0 }
   0x2   :  { %11 = vsyncpa [#allocation4], 0 }
   0x3   :  { %13 = vsyncpa [#allocation4 + $0x1], 0  ;;  %s625_s12 = smov 0   ;;  %s627_s13 = smov 0  }
   0x4   :  { %s629_s14 = smov 0   ;;  %s631_s15 = smov 0  }
   0x5 LB: > { %s646_s16 = sadd.s32 4294967295, %s597_s15   ;;  %s421_s17 = sadd.s32 4294967294, %s597_s15   ;;  %s597_s15 = sphi %s631_s15, %s802_s15   ;;  %s593_s14 = sphi %s629_s14, %s801_s14   ;;  %s589_s13 = sphi %s627_s13, %s800_s13   ;;  %s585_s12 = sphi %s625_s12, %s799_s12  }
   0x6   : > { %s650_s18 = sadd.s32 1, %s597_s15   ;;  %s78_s19 = sadd.s32 1, %s593_s14 }
   0x7   : > { %s75_s20 = ssub.s32 %s597_s15, %s650_s18  ;;  %p85_p0 = scmp.ne.s32.totalorder %s593_s14, %s589_s13 }
   0x8   : > { %p76_p1 = scmp.eq.s32.totalorder %s75_s20, 0  ;;  %p86_p2 = scmp.eq.s32.totalorder %s597_s15, 0 }
   0x9   : > { %p91_p3 = scmp.ne.s32.totalorder %s589_s13, %s585_s12  ;;  %p92_p4 = scmp.eq.s32.totalorder %s646_s16, 0 }
   0xa   : > { %s662_s21 = scalar_select %p76_p1, %s593_s14, %s78_s19  }
   0xb   : > { %p87_p5 = por %p86_p2, %p85_p0  ;;  %p664_p6 = por %p92_p4, %p91_p3 }
   0xc   : > { %p115_p7 = scmp.eq.s32.totalorder %s646_s16, 1  ;;  %p121_p8 = scmp.eq.s32.totalorder %s421_s17, 1 }
   0xd   : > { %p423_p9 = scmp.ge.s32.totalorder %s597_s15, 2  ;;  %p452_p10 = scmp.lt.s32.totalorder %s597_s15, 2 }
   0xe   : > { %p671_p11 = por %p115_p7, %p85_p0  ;;  %p675_p12 = por %p121_p8, %p91_p3 }
   0xf   : > { %s157_s25 = sand.u32 1, %s593_s14   ;;  %s435_s26 = smul.u32 48, %s597_s15 }
  0x10   : > { %s437_s27 = smul.u32 48, %s157_s25  ;;  %p684_p13 = pnand %p452_p10, %p87_p5 }
  0x11   : > { %s167_s30 = scalar_lea.hbm %s793_s2, %s435_s26  ;;  %s158_s8 = scalar_lea.sflag [#allocation3], %s157_s25 }
  0x12   : > { %s168_s5 = sshll.u32 %s167_s30, 4  ;;  %s161_s6 = scalar_lea.vmem [#allocation2], %s437_s27  ;;  %s169_s5 = int_to_ptr.hbm [resolvable:$true] %s168_s5 }
  0x13   : > { %s170_s7 = sshll.u32 %s161_s6, 4  ;;  %s501_s9 = sshra.s32 %s169_s5, 4  ;;  %s171_s7 = int_to_ptr.vmem [resolvable:$true] %s170_s7  ;;  %s502_s9 = int_to_ptr.hbm [resolvable:$true] %s501_s9 }
  0x14   : > { %s503_s10 = scalar_lea.hbm %s502_s9, 48  ;;  %p505_p1 = pneg %p684_p13 }
  0x15   : > { %p504_p0 = scmp.ne.s32.totalorder %s502_s9, %s503_s10  ;;  %s508_s19 = scalar_lea.hbm %s793_s2, 96 }
  0x16   : > { %p509_p4 = scmp.lt.s32.totalorder %s502_s9, %s793_s2  ;;  %p510_p5 = scmp.lt.s32.totalorder %s508_s19, %s503_s10 }
  0x17   : > { %p506_p2 = pnand %p505_p1, %p504_p0 }
  0x18   : > { %p511_p7 = por %p510_p5, %p509_p4 }
  0x19   : > { %p507_p3 = pneg %p506_p2 }
  0x1b   : > { %p512_p8 = pnand %p511_p7, %p507_p3 }
  0x1d   : > { %515 = shalt.err (!%p512_p8)
}
  0x1e   : > { %s599_s25 = smov 128   ;;  %s600_s27 = smov 8  }
  0x1f   : > { %447 = dma.hbm_to_vmem [thread:$0]  (!%p684_p13), %s169_s5, 768, %s171_s7, %s158_s8, %s599_s25, %s599_s25, %s600_s27  }
  0x20   : > { %p426_p10 = scmp.ge.s32.totalorder %s597_s15, 1  ;;  %p178_p0 = scmp.lt.s32.totalorder %s597_s15, 3 }
  0x22   : > { %p179_p1 = pnand %p426_p10, %p178_p0 }
  0x23   : > { %s701_s28 = sand.u32 (!%p179_p1), 1, %s589_s13  }
  0x24   : > { %182 = sbr.rel (%p179_p1) target bundleno = 185 (0xb9), region = 32  ;;  %s185_s30 = scalar_lea.sflag (!%p179_p1), [#allocation3], %s701_s28 }
  0x25   : > { %s438_s29 = smul.u32 (!%p179_p1), 48, %s701_s28 }
  0x27   : > { %s705_s6 = scalar_lea.vmem (!%p179_p1), [#allocation2], %s438_s29 }
  0x29   : > { %576 = dma.done.wait (%p664_p6), %s185_s30, 768  }
  0x2a   : > { %578 = vsyncadd (%p664_p6), %s185_s30, 4294966528  ;;  %s220_s4 = smul.u32 3, %s646_s16  ;;  %v601_v0 = vmov 0   ;;  %vm306_vm0 = vcmask 261120   ;;  %v602_v7 = vmov 0.0   ;;  %v236_v9 = vld [vmem:[%s705_s6 + $0x20] sm:$0xff] }
  0x2b   : > { %493 = vset.pattern.permute.xlu1 %v601_v0  ;;  %492 = vset.pattern.permute.xlu0 %v601_v0  ;;  %s439_s22 = smul.u32 96, %s701_s28  ;;  %v237_v10 = vld [vmem:[%s705_s6 + $0x28] sm:$0xff]  ;;  %vm292_vm1 = vcmask 130048   ;;  %v232_v18 = vld [vmem:[%s705_s6] sm:$0xff]  ;;  %vm299_vm2 = vcmask 261248   ;;  %v234_v22 = vld [vmem:[%s705_s6 + $0x10] sm:$0xff] }
  0x2c   : > { %p221_p13 = scmp.lt.s32.totalorder %s220_s4, 5  ;;  %494 = vset.pattern.permute.xlu2 %v601_v0  ;;  %v233_v19 = vld [vmem:[%s705_s6 + $0x8] sm:$0xff]  ;;  %s436_s19 = smul.u32 96, %s646_s16  ;;  %v235_v23 = vld [vmem:[%s705_s6 + $0x18] sm:$0xff] }
  0x2d   : > { %s719_s17 = scalar_lea.vmem [#allocation5], %s439_s22  ;;  %s314_s29 = scalar_lea.sflag [#allocation4], %s701_s28 }
  0x2e   : > { %s804_s4 = smov (!%p221_p13, %s220_s4), 5  ;;  %307 = vst.msk [vmem:[%s719_s17 + $0x10] sm:$0xff] %vm306_vm0, %v602_v7  ;;  %s326_s26 = scalar_lea.hbm %s794_s3, %s436_s19 }
  0x2f   : > { %s223_s8 = scalar_lea.vmem %s791_s0, %s804_s4  ;;  %s228_s11 = scalar_lea.vmem %s792_s1, %s804_s4  ;;  %308 = vst.msk [vmem:[%s719_s17 + $0x18] sm:$0xff] %vm306_vm0, %v602_v7 }
  0x30   : > { %v495_v1 = vld [vmem:[%s223_s8 + $0x2] ss:$0 sm:$0xff]  ;;  %v496_v2 = vld [vmem:[%s223_s8] ss:$0 sm:$0xff]  ;;  %v499_v3 = vld [vmem:[%s228_s11 + $0x1] ss:$0 sm:$0xff] }
  0x31   : > { %256 = vperm.xlu1 %493, %v495_v1   ;;  %248 = vperm.xlu0 %492, %v496_v2   ;;  %v497_v4 = vld [vmem:[%s228_s11] ss:$0 sm:$0xff]  ;;  %v498_v5 = vld [vmem:[%s223_s8 + $0x1] ss:$0 sm:$0xff]  ;;  %v500_v6 = vld [vmem:[%s228_s11 + $0x2] ss:$0 sm:$0xff] }
  0x32   : > { %279 = vperm.xlu2 %494, %v499_v3   ;;  %309 = vst.msk [vmem:[%s719_s17 + $0x30] sm:$0xff] %vm306_vm0, %v602_v7  ;;  %s327_s25 = sshll.u32 %s719_s17, 4  ;;  %s329_s27 = sshll.u32 %s326_s26, 4  ;;  %s328_s25 = int_to_ptr.vmem [resolvable:$true] %s327_s25  ;;  %s330_s27 = int_to_ptr.hbm [resolvable:$true] %s329_s27 }
  0x33   : > { %310 = vst.msk [vmem:[%s719_s17 + $0x38] sm:$0xff] %vm306_vm0, %v602_v7  ;;  %s545_s30 = sshra.s32 %s330_s27, 4  ;;  %s551_s7 = scalar_lea.hbm %s794_s3, 192  ;;  %s546_s30 = int_to_ptr.hbm [resolvable:$true] %s545_s30 }
  0x34   : > { %311 = vst.msk [vmem:[%s719_s17 + $0x50] sm:$0xff] %vm306_vm0, %v602_v7  ;;  %s547_s6 = scalar_lea.hbm %s546_s30, 96  ;;  %p552_p4 = scmp.lt.s32.totalorder %s546_s30, %s794_s3 }
  0x35   : > { %312 = vst.msk [vmem:[%s719_s17 + $0x58] sm:$0xff] %vm306_vm0, %v602_v7  ;;  %p548_p6 = scmp.ne.s32.totalorder %s546_s30, %s547_s6  ;;  %p553_p5 = scmp.lt.s32.totalorder %s551_s7, %s547_s6 }
  0x37   : > { %p549_p2 = pnand %p548_p6, %p671_p11  ;;  %p554_p7 = por %p553_p5, %p552_p4 }
  0x39   : > { %275 = vperm.xlu1 %493, %v497_v4   ;;  %252 = vperm.xlu0 %492, %v498_v5   ;;  %p550_p3 = pneg %p549_p2 }
  0x3a   : > { %283 = vperm.xlu2 %494, %v500_v6  }
  0x3b   : > { %p555_p8 = pnand %p554_p7, %p550_p3 }
  0x8c   : > { %v280_v8 = vpop.permute.xlu2 %279 }
  0x94   : > { %v284_v12 = vpop.permute.xlu2 %283 }
  0xa3   : > { %v257_v11 = vpop.permute.xlu1 %256  ;;  %v249_v15 = vpop.permute.xlu0 %248 }
  0xa4   : > { %v263_v13 = vmul.f32 %v257_v11, %v236_v9  ;;  %v264_v14 = vmul.f32 %v257_v11, %v237_v10  ;;  %v259_v20 = vmul.f32 %v249_v15, %v232_v18  ;;  %v260_v21 = vmul.f32 %v249_v15, %v233_v19 }
  0xa6   : > { %v290_v16 = vadd.f32 %v284_v12, %v263_v13  ;;  %v291_v17 = vadd.f32 %v284_v12, %v264_v14 }
  0xa8   : > { %297 = vst.msk [vmem:[%s719_s17 + $0x40] sm:$0xff] %vm292_vm1, %v290_v16 }
  0xa9   : > { %298 = vst.msk [vmem:[%s719_s17 + $0x48] sm:$0xff] %vm292_vm1, %v291_v17 }
  0xaa   : > { %304 = vst.msk [vmem:[%s719_s17 + $0x40] sm:$0xff] %vm299_vm2, %v602_v7 }
  0xab   : > { %305 = vst.msk [vmem:[%s719_s17 + $0x48] sm:$0xff] %vm299_vm2, %v602_v7  ;;  %v276_v24 = vpop.permute.xlu1 %275  ;;  %v253_v27 = vpop.permute.xlu0 %252 }
  0xac   : > { %v286_v25 = vadd.f32 %v276_v24, %v259_v20  ;;  %v287_v26 = vadd.f32 %v276_v24, %v260_v21  ;;  %v261_v28 = vmul.f32 %v253_v27, %v234_v22  ;;  %v262_v29 = vmul.f32 %v253_v27, %v235_v23 }
  0xae   : > { %293 = vst.msk [vmem:[%s719_s17] sm:$0xff] %vm292_vm1, %v286_v25  ;;  %v288_v30 = vadd.f32 %v280_v8, %v261_v28  ;;  %v289_v31 = vadd.f32 %v280_v8, %v262_v29 }
  0xaf   : > { %294 = vst.msk [vmem:[%s719_s17 + $0x8] sm:$0xff] %vm292_vm1, %v287_v26 }
  0xb0   : > { %300 = vst.msk [vmem:[%s719_s17] sm:$0xff] %vm299_vm2, %v602_v7 }
  0xb1   : > { %301 = vst.msk [vmem:[%s719_s17 + $0x8] sm:$0xff] %vm299_vm2, %v602_v7 }
  0xb2   : > { %295 = vst.msk [vmem:[%s719_s17 + $0x20] sm:$0xff] %vm292_vm1, %v288_v30 }
  0xb3   : > { %296 = vst.msk [vmem:[%s719_s17 + $0x28] sm:$0xff] %vm292_vm1, %v289_v31 }
  0xb4   : > { %302 = vst.msk [vmem:[%s719_s17 + $0x20] sm:$0xff] %vm299_vm2, %v602_v7 }
  0xb5   : > { %303 = vst.msk [vmem:[%s719_s17 + $0x28] sm:$0xff] %vm299_vm2, %v602_v7 }
  0xb6   : > { %558 = shalt.err (!%p555_p8)
}
  0xb7   : > { %s603_s28 = smov 128   ;;  %s604_s10 = smov 8  }
  0xb8   : > { %442 = dma.vmem_to_hbm [thread:$0]  (%p671_p11), %s328_s25, 1536, %s330_s27, %s314_s29, %s603_s28, %s603_s28, %s604_s10  }
  0xb9 PF: > { %s344_s11 = sand.u32 1, %s585_s12   ;;  %p449_p10 = pnand %p423_p9, %p675_p12 }
  0xba   : > { %s345_s22 = scalar_lea.sflag [#allocation4], %s344_s11 }
  0xbb   : > { %p450_p0 = pneg %p449_p10 }
  0xbd   : > { %580 = dma.done.wait (%p450_p0), %s345_s22, 1536  }
  0xbe   : > { %582 = vsyncadd (%p450_p0), %s345_s22, 4294965760  ;;  %p16_p1 = scmp.ge.s32.totalorder %s650_s18, 4   ;;  %s799_s12 = smov %s589_s13 }
  0xbf   : > { %s800_s13 = smov %s593_s14  ;;  %s801_s14 = smov %s662_s21 }
  0xc0   : > { %s802_s15 = smov %s650_s18  ;;  %18 = sbr.rel (!%p16_p1) target bundleno = 5 (0x5), region = 83 }
  0xc5   :  { %351 = vsyncpa [#allocation3], 1 }
  0xc6   :  { %353 = vsyncpa [#allocation3 + $0x1], 1 }
  0xc7   :  { %354 = vsyncpa [#allocation4], 1 }
  0xc8   :  { %356 = vsyncpa [#allocation4 + $0x1], 1 }

</bundles_post_ra>
